<compile_context>
chip_gen: v6e
topology: v6e:2x2x1
jax: 0.10.0
libtpu: 0.0.40
codegen_flags: <defaults>
</compile_context>

<pallas_src>
import jax
import jax.numpy as jnp
from jax.experimental import pallas as pl
from jax.experimental.pallas import tpu as pltpu


def _make_addcoords_kernel(C, H, W, with_r):
    """Kernel over a (TB, C*HW) input block -> (TB, C_out*HW) output block."""
    HW = H * W
    sx = 2.0 / (H - 1)          # torch: xx normalized by (x_dim - 1)
    sy = 2.0 / (W - 1)          # torch: yy normalized by (y_dim - 1)
    pow2_w = (W & (W - 1)) == 0

    def kernel(x_ref, o_ref):
        tb = o_ref.shape[0]

        # Pass-through input channels: lane-aligned (C*HW multiple of 128) copy.
        o_ref[:, : C * HW] = x_ref[...]

        # Flattened spatial index p = i*W + j along the lane axis.
        p = jax.lax.broadcasted_iota(jnp.int32, (1, HW), 1)
        if pow2_w:
            shift = W.bit_length() - 1
            row = (p >> shift).astype(jnp.float32)        # i
            col = (p & (W - 1)).astype(jnp.float32)       # j
        else:
            pf = p.astype(jnp.float32)                    # exact: H*W < 2**24 (checked)
            row = jnp.floor((pf + 0.5) * (1.0 / W))
            col = pf - row * W

        xx = col * sx - 1.0     # value at (i, j) = 2*j/(x_dim-1) - 1
        yy = row * sy - 1.0     # value at (i, j) = 2*i/(y_dim-1) - 1

        # Batch-invariant coordinate rows: broadcast over the TB samples and write
        # each channel directly to its (128-aligned) lane range.
        o_ref[:, C * HW:(C + 1) * HW] = (
            jnp.broadcast_to(xx, (tb, HW)).astype(o_ref.dtype))
        o_ref[:, (C + 1) * HW:(C + 2) * HW] = (
            jnp.broadcast_to(yy, (tb, HW)).astype(o_ref.dtype))
        if with_r:
            rr = jnp.sqrt(xx * xx + yy * yy)
            o_ref[:, (C + 2) * HW:] = (
                jnp.broadcast_to(rr, (tb, HW)).astype(o_ref.dtype))

    return kernel


def _choose_batch_tile(B, in_row_bytes, out_row_bytes):
    """Samples per grid step.

    Targets ~2 MiB of in+out data per step so per-step overhead is amortized and
    DMA bursts are >= ~1 MiB, while the double-buffered footprint 2*TB*(in+out)
    stays around ~4 MiB (fits every generation's scoped-VMEM default).  TB is a
    multiple of 8 (full sublane tiles) unless it covers the whole (small) batch.
    """
    per_row = in_row_bytes + out_row_bytes
    target = max(8, (2 << 20) // max(per_row, 1))
    target = (target // 8) * 8
    if B <= target:
        # Keep >= 2 grid steps when we can still fill full sublane tiles, so both
        # v7x TensorCores get work; otherwise take the whole batch in one step.
        if B >= 16:
            return min(B, ((B + 15) // 16) * 8)
        return B
    return target


def add_coords(x, with_r=False):
    """AddCoords forward. x: (B, C, H, W) NCHW -> (B, C+2(+1), H, W)."""
    x = jnp.asarray(x)
    B, C, H, W = x.shape
    if H != W:
        # torch.cat(dim=1) in the original module requires square spatial dims.
        raise ValueError("AddCoords requires x_dim == y_dim (square spatial dims)")
    HW = H * W
    if (W & (W - 1)) != 0 and HW >= (1 << 24):
        raise ValueError("H*W must be < 2**24 for exact index math when W is not a "
                         "power of two")
    n_extra = 3 if with_r else 2
    C_out = C + n_extra
    itemsize = jnp.dtype(x.dtype).itemsize

    # Free metadata reshape (contiguous NCHW): batch on the sublane axis,
    # channels*spatial flattened onto the lane axis (lane-dense output slab).
    x_flat = x.reshape(B, C * HW)

    tb = _choose_batch_tile(B, C * HW * itemsize, C_out * HW * itemsize)
    grid = (pl.cdiv(B, tb),)

    kernel = _make_addcoords_kernel(C, H, W, with_r)

    out_flat = pl.pallas_call(
        kernel,
        out_shape=jax.ShapeDtypeStruct((B, C_out * HW), x.dtype),
        grid=grid,
        in_specs=[pl.BlockSpec((tb, C * HW), lambda i: (i, 0))],
        out_specs=pl.BlockSpec((tb, C_out * HW), lambda i: (i, 0)),
        compiler_params=pltpu.CompilerParams(
            dimension_semantics=("parallel",)),
        cost_estimate=pl.CostEstimate(
            flops=B * n_extra * HW * 4,
            transcendentals=(B * HW if with_r else 0),
            bytes_accessed=(B * C * HW + B * C_out * HW) * itemsize,
        ),
    )(x_flat)

    return out_flat.reshape(B, C_out, H, W)


# ---------------- pure-JAX reference (mirrors the torch code exactly) ----------------
def add_coords_reference(x, with_r=False):
    B, C, H, W = x.shape        # x_dim = H, y_dim = W
    xx = jnp.tile(jnp.arange(H, dtype=jnp.float32)[None, None, None, :],
                  (B, 1, W, 1))                         # (B,1,y_dim,x_dim)
    yy = jnp.tile(jnp.arange(W, dtype=jnp.float32)[None, None, None, :],
                  (B, 1, H, 1))                         # (B,1,x_dim,y_dim)
    yy = jnp.transpose(yy, (0, 1, 3, 2))                # (B,1,y_dim,x_dim)
    xx = xx / (H - 1) * 2.0 - 1.0
    yy = yy / (W - 1) * 2.0 - 1.0
    ret = jnp.concatenate([x, xx.astype(x.dtype), yy.astype(x.dtype)], axis=1)
    if with_r:
        rr = jnp.sqrt(xx ** 2 + yy ** 2)
        ret = jnp.concatenate([ret, rr.astype(x.dtype)], axis=1)
    return ret


if __name__ == "__main__":
    key = jax.random.PRNGKey(0)

    # Small shape consistent with the module's usage.
    B, C, H, W = 2, 4, 16, 16
    x = jax.random.normal(key, (B, C, H, W), jnp.float32)

    # Default (with_r=False)
    out = jax.block_until_ready(add_coords(x, with_r=False))
    ref = add_coords_reference(x, with_r=False)
    assert out.shape == (B, C + 2, H, W)
    assert jnp.allclose(out, ref, rtol=1e-6, atol=1e-6), "mismatch (with_r=False)"

    # Optional radial channel (with_r=True)
    out_r = jax.block_until_ready(add_coords(x, with_r=True))
    ref_r = add_coords_reference(x, with_r=True)
    assert out_r.shape == (B, C + 3, H, W)
    assert jnp.allclose(out_r, ref_r, rtol=1e-6, atol=1e-6), "mismatch (with_r=True)"

    # Exercise the batch-tiled multi-step grid path (incl. a partial edge block).
    B2 = 24
    x2 = jax.random.normal(jax.random.PRNGKey(0), (B2, C, H, W), jnp.float32)
    out2 = jax.block_until_ready(add_coords(x2, with_r=False))
    ref2 = add_coords_reference(x2, with_r=False)
    assert out2.shape == (B2, C + 2, H, W)
    assert jnp.allclose(out2, ref2, rtol=1e-6, atol=1e-6), "mismatch (batched)"

    print("KERNEL_OK")
</pallas_src>

<mosaic_0001>
module attributes {stable_mosaic.version = 11 : i64} {
  func.func @kernel(%arg0: i32, %arg1: memref<2x1024xf32, #tpu.memory_space<vmem>>, %arg2: memref<2x1536xf32, #tpu.memory_space<vmem>>) attributes {dimension_semantics = [#tpu.dimension_semantics<parallel>], iteration_bounds = array<i64: 1>, scalar_prefetch = 0 : i64, scratch_operands = 0 : i64, tpu.core_type = #tpu.core_type<tc>, window_params = [{transform_indices = @transform_0, window_bounds = array<i64: 2, 1024>}, {transform_indices = @transform_1, window_bounds = array<i64: 2, 1536>}]} {
    %c0 = arith.constant 0 : index
    %c0_0 = arith.constant 0 : index
    %0 = vector.load %arg1[%c0, %c0_0] : memref<2x1024xf32, #tpu.memory_space<vmem>>, vector<2x1024xf32>
    %c0_1 = arith.constant 0 : index
    %c0_2 = arith.constant 0 : index
    %1 = vector.load %arg2[%c0_1, %c0_2] : memref<2x1536xf32, #tpu.memory_space<vmem>>, vector<2x1024xf32>
    tpu.vector_store %arg2[%c0_1, %c0_2], %0 {strides = array<i32>} : memref<2x1536xf32, #tpu.memory_space<vmem>>, vector<2x1024xf32>,
    %2 = tpu.iota {dimensions = array<i32: 1>} : vector<1x256xi32>
    %c4_i32 = arith.constant 4 : i32
    %3 = vector.broadcast %c4_i32 : i32 to vector<1x256xi32>
    %4 = arith.shrsi %2, %3 : vector<1x256xi32>
    %5 = arith.sitofp %4 : vector<1x256xi32> to vector<1x256xf32>
    %c15_i32 = arith.constant 15 : i32
    %6 = vector.broadcast %c15_i32 : i32 to vector<1x256xi32>
    %7 = arith.andi %2, %6 : vector<1x256xi32>
    %8 = arith.sitofp %7 : vector<1x256xi32> to vector<1x256xf32>
    %cst = arith.constant 0.13333334 : f32
    %9 = vector.broadcast %cst : f32 to vector<1x256xf32>
    %10 = arith.mulf %8, %9 : vector<1x256xf32>
    %cst_3 = arith.constant 1.000000e+00 : f32
    %11 = vector.broadcast %cst_3 : f32 to vector<1x256xf32>
    %12 = arith.subf %10, %11 : vector<1x256xf32>
    %cst_4 = arith.constant 0.13333334 : f32
    %13 = vector.broadcast %cst_4 : f32 to vector<1x256xf32>
    %14 = arith.mulf %5, %13 : vector<1x256xf32>
    %cst_5 = arith.constant 1.000000e+00 : f32
    %15 = vector.broadcast %cst_5 : f32 to vector<1x256xf32>
    %16 = arith.subf %14, %15 : vector<1x256xf32>
    %17 = vector.shape_cast %12 : vector<1x256xf32> to vector<1x256xf32>
    %18 = vector.broadcast %17 : vector<1x256xf32> to vector<2x256xf32>
    %c0_6 = arith.constant 0 : index
    %c1024 = arith.constant 1024 : index
    %19 = vector.load %arg2[%c0_6, %c1024] : memref<2x1536xf32, #tpu.memory_space<vmem>>, vector<2x256xf32>
    tpu.vector_store %arg2[%c0_6, %c1024], %18 {strides = array<i32>} : memref<2x1536xf32, #tpu.memory_space<vmem>>, vector<2x256xf32>,
    %20 = vector.shape_cast %16 : vector<1x256xf32> to vector<1x256xf32>
    %21 = vector.broadcast %20 : vector<1x256xf32> to vector<2x256xf32>
    %c0_7 = arith.constant 0 : index
    %c1280 = arith.constant 1280 : index
    %22 = vector.load %arg2[%c0_7, %c1280] : memref<2x1536xf32, #tpu.memory_space<vmem>>, vector<2x256xf32>
    tpu.vector_store %arg2[%c0_7, %c1280], %21 {strides = array<i32>} : memref<2x1536xf32, #tpu.memory_space<vmem>>, vector<2x256xf32>,
    return
  }
  func.func @transform_0(%arg0: i32) -> (i32, i32) {
    %c0_i32 = arith.constant 0 : i32
    %c0_i32_0 = arith.constant 0 : i32
    return %arg0, %c0_i32 : i32, i32
  }
  func.func @transform_1(%arg0: i32) -> (i32, i32) {
    %c0_i32 = arith.constant 0 : i32
    %c0_i32_0 = arith.constant 0 : i32
    return %arg0, %c0_i32 : i32, i32
  }
}

</mosaic_0001>

<bundles_post_ra>
// kernel: tpu_custom_call.1
= control target key start
LH: loop header
LB: loop body
LE: loop exit
PB: predicated region body
PF: predicated region fallthrough
CT: control target
= control target key end

     0   :  { %6 = vsyncpa [#allocation3], 0  ;;  %s153_s0 = inlined_call_operand.hbm [shape: f32[2,1024], index: 0, kind: input, shape index: {}]   ;;  %s154_s1 = inlined_call_operand.hbm [shape: f32[2,1536], index: 1, kind: output, shape index: {}]  }
   0x1   :  { %7 = vsyncpa [#allocation4], 0  ;;  %s135_s6 = smov [#allocation2]  }
   0x2   :  { %s14_s7 = sshll.u32 %s135_s6, 4  ;;  %s15_s7 = int_to_ptr.vmem [resolvable:$true] %s14_s7 }
   0x3   :  { %s99_s8 = scalar_lea.vmem %s15_s7, 256  ;;  %p104_p1 = scmp.lt.s32.totalorder %s15_s7, %s15_s7 }
   0x4   :  { %p100_p0 = scmp.ne.s32.totalorder %s15_s7, %s99_s8  ;;  %p105_p2 = scmp.lt.s32.totalorder %s99_s8, %s99_s8 }
   0x6   :  { %p106_p3 = por %p105_p2, %p104_p1 }
   0x8   :  { %p107_p4 = pnand %p106_p3, %p100_p0 }
   0xa   :  { %110 = shalt.err (!%p107_p4)
}
   0xb   :  { %17 = dma.hbm_to_vmem [thread:$0]  %s153_s0, 256, %s15_s7, [#allocation3]  }
   0xc   :  { %131 = dma.done.wait [#allocation3], 256  }
   0xd   :  { %132 = vsyncadd [#allocation3], 4294967040  ;;  %v25_v0 = vlaneseq  ;;  %v21_v9 = vld [vmem:[#allocation2] sm:$0xff]  ;;  %v22_v10 = vld [vmem:[#allocation2 + $0x8] sm:$0xff]  ;;  %s136_s0 = smov [#allocation5]  }
   0xe   :  { %23 = vst [vmem:[#allocation5] sm:$0xff] %v21_v9  ;;  %24 = vst [vmem:[#allocation5 + $0x8] sm:$0xff] %v22_v10  ;;  %s74_s11 = sshll.u32 %s136_s0, 4  ;;  %s75_s11 = int_to_ptr.vmem [resolvable:$true] %s74_s11 }
   0xf   :  { %v26_v1 = vand.u32 127, %v25_v0  ;;  %s111_s12 = scalar_lea.vmem %s75_s11, 384  ;;  %p116_p6 = scmp.lt.s32.totalorder %s75_s11, %s75_s11 }
  0x10   :  { %p112_p5 = scmp.ne.s32.totalorder %s75_s11, %s111_s12  ;;  %p117_p7 = scmp.lt.s32.totalorder %s111_s12, %s111_s12 }
  0x11   :  { %v27_v2 = vadd.s32 128, %v26_v1  ;;  %v32_v3 = vand.u32 15, %v26_v1  ;;  %v28_v4 = vshra.s32 %v26_v1, 4 }
  0x12   :  { %p118_p8 = por %p117_p7, %p116_p6 }
  0x13   :  { %v33_v5 = vand.u32 15, %v27_v2  ;;  %v34_v6 = vcvt.s32.f32 %v32_v3  ;;  %v29_v7 = vshra.s32 %v27_v2, 4  ;;  %v30_v8 = vcvt.s32.f32 %v28_v4 }
  0x14   :  { %p119_p9 = pnand %p118_p8, %p112_p5 }
  0x15   :  { %v35_v11 = vcvt.s32.f32 %v33_v5  ;;  %v36_v12 = vmul.f32 0.13333334, %v34_v6  ;;  %v31_v13 = vcvt.s32.f32 %v29_v7  ;;  %v40_v14 = vmul.f32 0.13333334, %v30_v8 }
  0x17   :  { %v37_v15 = vmul.f32 0.13333334, %v35_v11  ;;  %v83_v16 = vadd.f32 -1.0, %v36_v12  ;;  %v41_v17 = vmul.f32 0.13333334, %v31_v13  ;;  %v85_v18 = vadd.f32 -1.0, %v40_v14 }
  0x19   :  { %v84_v19 = vadd.f32 -1.0, %v37_v15  ;;  %v86_v20 = vadd.f32 -1.0, %v41_v17 }
  0x1b   :  { %v46_v21 = vcombine.low %v83_v16, %v84_v19  ;;  %v58_v22 = vcombine.low %v85_v18, %v86_v20 }
  0x1d   :  { %87 = vst.sshfl [vmem:[#allocation5 + $0x10] sm:$0x33 pattern:$0x76325410] %v46_v21 }
  0x1e   :  { %88 = vst.sshfl [vmem:[#allocation5 + $0x14] sm:$0x33 pattern:$0x76325410] %v58_v22 }
  0x1f   :  { %122 = shalt.err (!%p119_p9)
}
  0x20   :  { %77 = dma.vmem_to_hbm [thread:$0]  %s75_s11, 384, %s154_s1, [#allocation4]  }
  0x21   :  { %133 = dma.done.wait [#allocation4], 384  }
  0x22   :  { %134 = vsyncadd [#allocation4], 4294966912 }
  0x23   :  { %81 = vsyncpa [#allocation3], 1 }
  0x24   :  { %82 = vsyncpa [#allocation4], 1 }

</bundles_post_ra>
